<compile_context>
chip_gen: v7x
topology: tpu7x:2x2x1
jax: 0.10.0
libtpu: 0.0.40
codegen_flags: <defaults>
</compile_context>

<pallas_src>
import functools

import jax
import jax.numpy as jnp
from jax.experimental import pallas as pl
from jax.experimental.pallas import tpu as pltpu

LN_EPS = 1e-5  # PyTorch nn.LayerNorm default


def _sublayer_connection_kernel(*refs, dropout_p: float, use_dropout: bool):
    if use_dropout:
        x_ref, bits_ref, w_ref, b_ref, gamma_ref, beta_ref, o_ref = refs
    else:
        x_ref, w_ref, b_ref, gamma_ref, beta_ref, o_ref = refs
        bits_ref = None

    x = x_ref[...].astype(jnp.float32)                      # (TM, H)
    hidden = x.shape[-1]
    inv_h = 1.0 / float(hidden)

    # ---- LayerNorm over last dim (self.norm), single-pass statistics --------
    row_sum = jnp.sum(x, axis=-1, keepdims=True)
    row_sqs = jnp.sum(x * x, axis=-1, keepdims=True)
    mean = row_sum * inv_h
    var = row_sqs * inv_h - mean * mean
    inv_std = jax.lax.rsqrt(var + LN_EPS)
    x_norm = (x - mean) * inv_std
    x_norm = (x_norm * gamma_ref[...].astype(jnp.float32)
              + beta_ref[...].astype(jnp.float32))          # (TM, H)

    # ---- sublayer: Linear(H, H); bf16 MXU operands, f32 accumulation --------
    h = jnp.dot(x_norm.astype(jnp.bfloat16), w_ref[...],
                preferred_element_type=jnp.float32)
    h = h + b_ref[...].astype(jnp.float32)

    # ---- dropout (inverted, training mode): integer-threshold compare -------
    if use_dropout:
        threshold = jnp.uint32(min(int(dropout_p * 4294967296.0), 4294967295))
        keep = bits_ref[...] >= threshold                    # P(keep) = 1 - p
        h = jnp.where(keep, h * (1.0 / (1.0 - dropout_p)), 0.0)

    # ---- residual connection -------------------------------------------------
    o_ref[...] = (x + h).astype(o_ref.dtype)


def sublayer_connection(x, w, b, gamma, beta, *,
                        dropout_p: float = 0.1,
                        training: bool = True,
                        rng=None,
                        block_rows: int = 512):
    """x: (B, S, H) -> (B, S, H).  sublayer == Linear(H, H) with weight w, bias b."""
    B, S, H = x.shape
    N = B * S
    xf = x.reshape(N, H)

    w_bf16 = w.astype(jnp.bfloat16)           # resident weight, halved footprint
    b2 = b.reshape(1, H).astype(jnp.float32)
    g2 = gamma.reshape(1, H).astype(jnp.float32)
    be2 = beta.reshape(1, H).astype(jnp.float32)

    use_dropout = bool(training) and dropout_p > 0.0
    if use_dropout:
        if rng is None:
            rng = jax.random.PRNGKey(0)
        bits = jax.random.bits(rng, (N, H), dtype=jnp.uint32)

    # Row tile: full array if small, otherwise a sublane-aligned tile.
    tm = N if N <= block_rows else block_rows      # block_rows is a multiple of 8
    grid = (pl.cdiv(N, tm),)

    row_spec = pl.BlockSpec((tm, H), lambda i: (i, 0))       # x / bits / out
    w_spec = pl.BlockSpec((H, H), lambda i: (0, 0))          # resident weight
    vec_spec = pl.BlockSpec((1, H), lambda i: (0, 0))        # bias / gamma / beta

    in_specs = [row_spec]
    args = [xf]
    if use_dropout:
        in_specs.append(row_spec)
        args.append(bits)
    in_specs += [w_spec, vec_spec, vec_spec, vec_spec]
    args += [w_bf16, b2, g2, be2]

    # VMEM budget: double-buffered row tiles (x, out, [bits]) + resident params.
    tile_bytes = tm * H * xf.dtype.itemsize
    need = 2 * 2 * tile_bytes                          # x in + out, double-buffered
    if use_dropout:
        need += 2 * tm * H * 4                         # uint32 bits tile
    need += 2 * H * H * 2 + 8 * H * 4                  # bf16 weight + small vectors
    vmem_limit = int(min(128 * 1024 * 1024, max(2 * need, 16 * 1024 * 1024)))
    # TODO(synk): on v7x (64 MiB VMEM/TC) large H would additionally need an
    # output-column tile for the weight; not required at these shapes.

    kernel = functools.partial(_sublayer_connection_kernel,
                               dropout_p=float(dropout_p),
                               use_dropout=use_dropout)

    out = pl.pallas_call(
        kernel,
        out_shape=jax.ShapeDtypeStruct((N, H), x.dtype),
        grid=grid,
        in_specs=in_specs,
        out_specs=row_spec,
        compiler_params=pltpu.CompilerParams(
            dimension_semantics=("parallel",),
            vmem_limit_bytes=vmem_limit),
    )(*args)

    return out.reshape(B, S, H)


if __name__ == "__main__":
    key = jax.random.PRNGKey(0)
    B, S, H = 2, 8, 128          # H kept a multiple of 128 for lane-dense stores
    dropout_p = 0.1

    k_x, k_w, k_b, k_drop = jax.random.split(key, 4)
    x = jax.random.normal(k_x, (B, S, H), dtype=jnp.float32)

    # Deterministic parameter init (synthetic weights, no checkpoint load).
    gamma = jnp.ones((H,), dtype=jnp.float32)      # nn.LayerNorm default init
    beta = jnp.zeros((H,), dtype=jnp.float32)
    w = jax.random.normal(k_w, (H, H), dtype=jnp.float32) * (1.0 / jnp.sqrt(H))
    b = jax.random.normal(k_b, (H,), dtype=jnp.float32) * 0.01

    # Pure-JAX reference mirroring the kernel's math (one-pass LN stats,
    # bf16 matmul operands, f32 accumulation).
    def ref(x, drop_bits=None):
        xf = x.reshape(-1, H)
        mean = jnp.sum(xf, -1, keepdims=True) / H
        var = jnp.sum(xf * xf, -1, keepdims=True) / H - mean * mean
        xn = (xf - mean) * jax.lax.rsqrt(var + LN_EPS) * gamma + beta
        h = jnp.dot(xn.astype(jnp.bfloat16), w.astype(jnp.bfloat16),
                    preferred_element_type=jnp.float32) + b
        if drop_bits is not None:
            thr = jnp.uint32(min(int(dropout_p * 4294967296.0), 4294967295))
            keep = drop_bits >= thr
            h = jnp.where(keep, h * (1.0 / (1.0 - dropout_p)), 0.0)
        return x + h.reshape(B, S, H)

    # Training mode (dropout active; same bits derived from k_drop in both paths).
    out_train = sublayer_connection(x, w, b, gamma, beta,
                                    dropout_p=dropout_p, training=True, rng=k_drop)
    out_train = jax.block_until_ready(out_train)
    assert out_train.shape == (B, S, H) and out_train.dtype == x.dtype
    bits = jax.random.bits(k_drop, (B * S, H), dtype=jnp.uint32)
    assert jnp.allclose(out_train, ref(x, bits), atol=1e-3, rtol=1e-3)

    # Eval mode (dropout = identity).
    out_eval = sublayer_connection(x, w, b, gamma, beta,
                                   dropout_p=dropout_p, training=False)
    out_eval = jax.block_until_ready(out_eval)
    assert jnp.allclose(out_eval, ref(x), atol=1e-3, rtol=1e-3)

    print("KERNEL_OK")
</pallas_src>

<mosaic_0001>
module attributes {stable_mosaic.version = 11 : i64} {
  func.func @_sublayer_connection_kernel(%arg0: i32, %arg1: memref<16x128xf32, #tpu.memory_space<vmem>>, %arg2: memref<16x128xi32, #tpu.memory_space<vmem>>, %arg3: memref<128x128xbf16, #tpu.memory_space<vmem>>, %arg4: memref<1x128xf32, #tpu.memory_space<vmem>>, %arg5: memref<1x128xf32, #tpu.memory_space<vmem>>, %arg6: memref<1x128xf32, #tpu.memory_space<vmem>>, %arg7: memref<16x128xf32, #tpu.memory_space<vmem>>) attributes {dimension_semantics = [#tpu.dimension_semantics<parallel>], iteration_bounds = array<i64: 1>, scalar_prefetch = 0 : i64, scratch_operands = 0 : i64, tpu.core_type = #tpu.core_type<tc>, window_params = [{transform_indices = @transform_0, window_bounds = array<i64: 16, 128>}, {transform_indices = @transform_1, window_bounds = array<i64: 16, 128>}, {pipeline_mode = #tpu.pipeline_mode<synchronous>, transform_indices = @transform_2, window_bounds = array<i64: 128, 128>}, {pipeline_mode = #tpu.pipeline_mode<synchronous>, transform_indices = @transform_3, window_bounds = array<i64: 1, 128>}, {pipeline_mode = #tpu.pipeline_mode<synchronous>, transform_indices = @transform_4, window_bounds = array<i64: 1, 128>}, {pipeline_mode = #tpu.pipeline_mode<synchronous>, transform_indices = @transform_5, window_bounds = array<i64: 1, 128>}, {transform_indices = @transform_6, window_bounds = array<i64: 16, 128>}]} {
    %c0 = arith.constant 0 : index
    %c0_0 = arith.constant 0 : index
    %0 = vector.load %arg1[%c0, %c0_0] : memref<16x128xf32, #tpu.memory_space<vmem>>, vector<16x128xf32>
    %cst = arith.constant dense<0.000000e+00> : vector<16xf32>
    %1 = vector.multi_reduction <add>, %0, %cst [1] : vector<16x128xf32> to vector<16xf32>
    %2 = vector.shape_cast %1 : vector<16xf32> to vector<16x1xf32>
    %3 = arith.mulf %0, %0 : vector<16x128xf32>
    %cst_1 = arith.constant dense<0.000000e+00> : vector<16xf32>
    %4 = vector.multi_reduction <add>, %3, %cst_1 [1] : vector<16x128xf32> to vector<16xf32>
    %5 = vector.shape_cast %4 : vector<16xf32> to vector<16x1xf32>
    %cst_2 = arith.constant 7.812500e-03 : f32
    %6 = vector.broadcast %cst_2 : f32 to vector<16x1xf32>
    %7 = arith.mulf %2, %6 : vector<16x1xf32>
    %cst_3 = arith.constant 7.812500e-03 : f32
    %8 = vector.broadcast %cst_3 : f32 to vector<16x1xf32>
    %9 = arith.mulf %5, %8 : vector<16x1xf32>
    %10 = arith.mulf %7, %7 : vector<16x1xf32>
    %11 = arith.subf %9, %10 : vector<16x1xf32>
    %cst_4 = arith.constant 9.99999974E-6 : f32
    %12 = vector.broadcast %cst_4 : f32 to vector<16x1xf32>
    %13 = arith.addf %11, %12 : vector<16x1xf32>
    %14 = math.rsqrt %13 : vector<16x1xf32>
    %15 = vector.broadcast %7 : vector<16x1xf32> to vector<16x128xf32>
    %16 = arith.subf %0, %15 : vector<16x128xf32>
    %17 = vector.broadcast %14 : vector<16x1xf32> to vector<16x128xf32>
    %18 = arith.mulf %16, %17 : vector<16x128xf32>
    %c0_5 = arith.constant 0 : index
    %c0_6 = arith.constant 0 : index
    %19 = vector.load %arg5[%c0_5, %c0_6] : memref<1x128xf32, #tpu.memory_space<vmem>>, vector<1x128xf32>
    %20 = vector.broadcast %19 : vector<1x128xf32> to vector<16x128xf32>
    %21 = arith.mulf %18, %20 : vector<16x128xf32>
    %c0_7 = arith.constant 0 : index
    %c0_8 = arith.constant 0 : index
    %22 = vector.load %arg6[%c0_7, %c0_8] : memref<1x128xf32, #tpu.memory_space<vmem>>, vector<1x128xf32>
    %23 = vector.broadcast %22 : vector<1x128xf32> to vector<16x128xf32>
    %24 = arith.addf %21, %23 : vector<16x128xf32>
    %25 = arith.truncf %24 : vector<16x128xf32> to vector<16x128xbf16>
    %c0_9 = arith.constant 0 : index
    %c0_10 = arith.constant 0 : index
    %26 = vector.load %arg3[%c0_9, %c0_10] : memref<128x128xbf16, #tpu.memory_space<vmem>>, vector<128x128xbf16>
    %cst_11 = arith.constant dense<0.000000e+00> : vector<16x128xf32>
    %27 = tpu.matmul %25, %26, %cst_11 {dimension_numbers = #tpu.dot_dimension_numbers<[1], [0], [0], [1], [0, 0, 1, 1], [], []>} : vector<16x128xbf16>, vector<128x128xbf16>, vector<16x128xf32> -> vector<16x128xf32>
    %c0_12 = arith.constant 0 : index
    %c0_13 = arith.constant 0 : index
    %28 = vector.load %arg4[%c0_12, %c0_13] : memref<1x128xf32, #tpu.memory_space<vmem>>, vector<1x128xf32>
    %29 = vector.broadcast %28 : vector<1x128xf32> to vector<16x128xf32>
    %30 = arith.addf %27, %29 : vector<16x128xf32>
    %c0_14 = arith.constant 0 : index
    %c0_15 = arith.constant 0 : index
    %31 = vector.load %arg2[%c0_14, %c0_15] : memref<16x128xi32, #tpu.memory_space<vmem>>, vector<16x128xi32>
    %c429496729_i32 = arith.constant 429496729 : i32
    %32 = vector.broadcast %c429496729_i32 : i32 to vector<16x128xi32>
    %33 = arith.cmpi uge, %31, %32 : vector<16x128xi32>
    %cst_16 = arith.constant 1.11111116 : f32
    %34 = vector.broadcast %cst_16 : f32 to vector<16x128xf32>
    %35 = arith.mulf %30, %34 : vector<16x128xf32>
    %cst_17 = arith.constant 0.000000e+00 : f32
    %36 = vector.broadcast %cst_17 : f32 to vector<16x128xf32>
    %37 = arith.select %33, %35, %36 : vector<16x128xi1>, vector<16x128xf32>
    %38 = arith.addf %0, %37 : vector<16x128xf32>
    %c0_18 = arith.constant 0 : index
    %c0_19 = arith.constant 0 : index
    %39 = vector.load %arg7[%c0_18, %c0_19] : memref<16x128xf32, #tpu.memory_space<vmem>>, vector<16x128xf32>
    tpu.vector_store %arg7[%c0_18, %c0_19], %38 {strides = array<i32>} : memref<16x128xf32, #tpu.memory_space<vmem>>, vector<16x128xf32>,
    return
  }
  func.func @transform_0(%arg0: i32) -> (i32, i32) {
    %c0_i32 = arith.constant 0 : i32
    %c0_i32_0 = arith.constant 0 : i32
    return %arg0, %c0_i32 : i32, i32
  }
  func.func @transform_1(%arg0: i32) -> (i32, i32) {
    %c0_i32 = arith.constant 0 : i32
    %c0_i32_0 = arith.constant 0 : i32
    return %arg0, %c0_i32 : i32, i32
  }
  func.func @transform_2(%arg0: i32) -> (i32, i32) {
    %c0_i32 = arith.constant 0 : i32
    %c0_i32_0 = arith.constant 0 : i32
    %c0_i32_1 = arith.constant 0 : i32
    return %c0_i32, %c0_i32_0 : i32, i32
  }
  func.func @transform_3(%arg0: i32) -> (i32, i32) {
    %c0_i32 = arith.constant 0 : i32
    %c0_i32_0 = arith.constant 0 : i32
    %c0_i32_1 = arith.constant 0 : i32
    return %c0_i32, %c0_i32_0 : i32, i32
  }
  func.func @transform_4(%arg0: i32) -> (i32, i32) {
    %c0_i32 = arith.constant 0 : i32
    %c0_i32_0 = arith.constant 0 : i32
    %c0_i32_1 = arith.constant 0 : i32
    return %c0_i32, %c0_i32_0 : i32, i32
  }
  func.func @transform_5(%arg0: i32) -> (i32, i32) {
    %c0_i32 = arith.constant 0 : i32
    %c0_i32_0 = arith.constant 0 : i32
    %c0_i32_1 = arith.constant 0 : i32
    return %c0_i32, %c0_i32_0 : i32, i32
  }
  func.func @transform_6(%arg0: i32) -> (i32, i32) {
    %c0_i32 = arith.constant 0 : i32
    %c0_i32_0 = arith.constant 0 : i32
    return %arg0, %c0_i32 : i32, i32
  }
}

</mosaic_0001>

<bundles_post_ra>
// kernel: tpu_custom_call.1
= control target key start
LH: loop header
LB: loop body
LE: loop exit
PB: predicated region body
PF: predicated region fallthrough
CT: control target
= control target key end

     0   :  { %11 = vsyncpa [#allocation3], 0  ;;  %s543_s0 = inlined_call_operand.hbm [shape: f32[16,128], index: 0, kind: input, shape index: {}]   ;;  %s544_s1 = inlined_call_operand.hbm [shape: u32[16,128], index: 1, kind: input, shape index: {}]   ;;  %s545_s2 = inlined_call_operand.hbm [shape: bf16[128,128], index: 2, kind: input, shape index: {}]   ;;  %s546_s3 = inlined_call_operand.vmem [shape: f32[1,128], index: 3, kind: input, shape index: {}]   ;;  %s547_s4 = inlined_call_operand.vmem [shape: f32[1,128], index: 4, kind: input, shape index: {}]   ;;  %s548_s5 = inlined_call_operand.vmem [shape: f32[1,128], index: 5, kind: input, shape index: {}]   ;;  %s549_s6 = inlined_call_operand.hbm [shape: f32[16,128], index: 6, kind: output, shape index: {}]  }
   0x1   :  { %12 = vsyncpa [#allocation6], 0 }
   0x2   :  { %13 = vsyncpa [#allocation4], 0  ;;  %s411_s21 = smov [#allocation5]   ;;  %s412_s23 = smov [#allocation2]  }
   0x3   :  { %s31_s22 = sshll.u32 %s411_s21, 4  ;;  %s19_s24 = sshll.u32 %s412_s23, 4  ;;  %s32_s22 = int_to_ptr.vmem [resolvable:$true] %s31_s22  ;;  %s456_s24 = int_to_ptr.vmem [resolvable:$true] %s19_s24 }
   0x4   :  { %s317_s27 = scalar_lea.hbm %s544_s1, 256 }
   0x5   :  { %p318_p0 = scmp.ne.s32.totalorder %s544_s1, %s317_s27  ;;  %p321_p1 = scmp.lt.u32.totalorder %s317_s27, %s544_s1 }
   0x7   :  { %p323_p2 = pnand %p321_p1, %p318_p0 }
   0x9   :  { %326 = shalt.err (!%p323_p2)
}
   0xa   :  { %s327_s8 = scalar_lea.vmem %s32_s22, 256  ;;  %p332_p4 = scmp.lt.s32.totalorder %s32_s22, %s32_s22 }
   0xb   :  { %p328_p3 = scmp.ne.s32.totalorder %s32_s22, %s327_s8  ;;  %p333_p5 = scmp.lt.s32.totalorder %s327_s8, %s327_s8 }
   0xd   :  { %p334_p6 = por %p333_p5, %p332_p4 }
   0xf   :  { %p335_p7 = pnand %p334_p6, %p328_p3 }
  0x11   :  { %338 = shalt.err (!%p335_p7)
}
  0x12   :  { %s413_s9 = smov 128   ;;  %s414_s10 = smov 8  }
  0x13   :  { %37 = dma.hbm_to_vmem [thread:$0]  %s544_s1, 256, %s32_s22, [#allocation6], %s413_s9, %s413_s9, %s414_s10  }
  0x14   :  { %s339_s15 = scalar_lea.hbm %s543_s0, 256 }
  0x15   :  { %p340_p8 = scmp.ne.s32.totalorder %s543_s0, %s339_s15  ;;  %p343_p9 = scmp.lt.u32.totalorder %s339_s15, %s543_s0 }
  0x17   :  { %p345_p10 = pnand %p343_p9, %p340_p8 }
  0x19   :  { %348 = shalt.err (!%p345_p10)
}
  0x1a   :  { %s349_s20 = scalar_lea.vmem %s456_s24, 256  ;;  %p354_p12 = scmp.lt.s32.totalorder %s456_s24, %s456_s24 }
  0x1b   :  { %p350_p11 = scmp.ne.s32.totalorder %s456_s24, %s349_s20  ;;  %p355_p13 = scmp.lt.s32.totalorder %s349_s20, %s349_s20 }
  0x1d   :  { %p356_p0 = por %p355_p13, %p354_p12 }
  0x1f   :  { %p357_p1 = pnand %p356_p0, %p350_p11 }
  0x21   :  { %360 = shalt.err (!%p357_p1)
}
  0x22   :  { %25 = dma.hbm_to_vmem [thread:$0]  %s543_s0, 256, %s456_s24, [#allocation3], %s413_s9, %s413_s9, %s414_s10  }
  0x23   :  { %s415_s22 = smov [#allocation7]   ;;  %s361_s27 = scalar_lea.hbm %s545_s2, 1024 }
  0x24   :  { %s43_s23 = sshll.u32 %s415_s22, 4  ;;  %p362_p2 = scmp.ne.s32.totalorder %s545_s2, %s361_s27  ;;  %s44_s23 = int_to_ptr.vmem [resolvable:$true] %s43_s23 }
  0x25   :  { %p365_p3 = scmp.lt.u32.totalorder %s361_s27, %s545_s2 }
  0x27   :  { %p367_p4 = pnand %p365_p3, %p362_p2 }
  0x29   :  { %370 = shalt.err (!%p367_p4)
}
  0x2a   :  { %s371_s8 = scalar_lea.vmem %s44_s23, 1024  ;;  %p376_p6 = scmp.lt.s32.totalorder %s44_s23, %s44_s23 }
  0x2b   :  { %p372_p5 = scmp.ne.s32.totalorder %s44_s23, %s371_s8  ;;  %p377_p7 = scmp.lt.s32.totalorder %s371_s8, %s371_s8 }
  0x2d   :  { %p378_p8 = por %p377_p7, %p376_p6 }
  0x2f   :  { %p379_p9 = pnand %p378_p8, %p372_p5 }
  0x31   :  { %382 = shalt.err (!%p379_p9)
}
  0x32   :  { %s416_s0 = smov 64   ;;  %s417_s24 = smov 4  }
  0x33   :  { %49 = dma.hbm_to_vmem [thread:$0]  %s545_s2, 1024, %s44_s23, [#allocation6], %s416_s0, %s416_s0, %s417_s24  }
  0x34   :  { %405 = dma.done.wait [#allocation3], 256  }
  0x35   :  { %406 = vsyncadd [#allocation3], 4294967040 }
  0x36   :  { %407 = dma.done.wait [#allocation6], 1280  }
  0x37   :  { %408 = vsyncadd [#allocation6], 4294966016  ;;  %v418_v0 = vmov 0.0   ;;  %v505_v1 = vld [vmem:[#allocation2] sm:$0xff]  ;;  %v507_v2 = vld [vmem:[#allocation2 + $0x8] sm:$0xff]  ;;  %vm419_vm0 = vmmov 0  }
  0x38   :  { %275 = vmatprep.subr.bf16.mxu0 %v418_v0  ;;  %68 = vadd.xlane.f32.xlu0 %v505_v1  ;;  %v72_v3 = vmul.f32 %v505_v1, %v505_v1  ;;  %v73_v4 = vmul.f32 %v507_v2, %v507_v2  ;;  %v305_v5 = vld [vmem:[#allocation7] sm:$0xff]   ;;  %v306_v6 = vld [vmem:[#allocation7 + $0x8] sm:$0xff]   ;;  %v307_v7 = vld [vmem:[#allocation7 + $0x10] sm:$0xff]  }
  0x39   :  { %276 = vmatpush3.bf16.msra.mxu0 %v305_v5  ;;  %v308_v8 = vld [vmem:[#allocation7 + $0x18] sm:$0xff]   ;;  %v309_v9 = vld [vmem:[#allocation7 + $0x20] sm:$0xff]   ;;  %291 = vmatprep.mubr.msk.bf16.mxu0 %vm419_vm0, %v418_v0  ;;  %v310_v10 = vld [vmem:[#allocation7 + $0x28] sm:$0xff]  }
  0x3a   :  { %74 = vadd.xlane.f32.xlu1 %v72_v3  ;;  %277 = vmatprep.subr.bf16.mxu0 %v418_v0  ;;  %v311_v11 = vld [vmem:[#allocation7 + $0x30] sm:$0xff]   ;;  %v312_v12 = vld [vmem:[#allocation7 + $0x38] sm:$0xff]   ;;  %v255_v30 = vld [vmem:[%s547_s4] ss:$0 sm:$0xff]  ;;  %s420_s4 = smov [#allocation8]  }
  0x3b   :  { %v256_v35 = vld [vmem:[%s548_s5] ss:$0 sm:$0xff]  ;;  %v225_v41 = vld [vmem:[#allocation5] sm:$0xff]  ;;  %v226_v45 = vld [vmem:[#allocation5 + $0x8] sm:$0xff]  ;;  %s242_s5 = sshll.u32 %s420_s4, 4  ;;  %s243_s5 = int_to_ptr.vmem [resolvable:$true] %s242_s5 }
  0x3c   :  { %70 = vadd.xlane.f32.xlu0 %v507_v2  ;;  %v257_v40 = vld [vmem:[%s546_s3] ss:$0 sm:$0xff]  ;;  %vm227_vm1 = vcmp.ge.u32.totalorder %v225_v41, 429496729  ;;  %vm228_vm2 = vcmp.ge.u32.totalorder %v226_v45, 429496729  ;;  %p388_p11 = scmp.lt.s32.totalorder %s243_s5, %s243_s5 }
  0x3d   :  { %278 = vmatpush3.bf16.msra.mxu0 %v306_v6  ;;  %s383_s3 = scalar_lea.vmem %s243_s5, 256 }
  0x3e   :  { %76 = vadd.xlane.f32.xlu1 %v73_v4  ;;  %279 = vmatprep.subr.bf16.mxu0 %v418_v0  ;;  %p384_p10 = scmp.ne.s32.totalorder %s243_s5, %s383_s3  ;;  %p389_p12 = scmp.lt.s32.totalorder %s383_s3, %s383_s3 }
  0x40   :  { %p390_p13 = por %p389_p12, %p388_p11 }
  0x41   :  { %280 = vmatpush3.bf16.msra.mxu0 %v307_v7 }
  0x42   :  { %281 = vmatprep.subr.bf16.mxu0 %v418_v0  ;;  %p391_p0 = pnand %p390_p13, %p384_p10 }
  0x45   :  { %282 = vmatpush3.bf16.msra.mxu0 %v308_v8 }
  0x46   :  { %283 = vmatprep.subr.bf16.mxu0 %v418_v0 }
  0x49   :  { %284 = vmatpush3.bf16.msra.mxu0 %v309_v9 }
  0x4a   :  { %285 = vmatprep.subr.bf16.mxu0 %v418_v0 }
  0x4d   :  { %286 = vmatpush3.bf16.msra.mxu0 %v310_v10 }
  0x4e   :  { %287 = vmatprep.subr.bf16.mxu0 %v418_v0 }
  0x51   :  { %288 = vmatpush3.bf16.msra.mxu0 %v311_v11 }
  0x52   :  { %289 = vmatprep.subr.bf16.mxu0 %v418_v0 }
  0x55   :  { %290 = vmatpush3.bf16.msra.mxu0 %v312_v12 }
  0xc5   :  { %v69_v13 = vpop.xlane.xlu0 %68 }
  0xc6   :  { %v78_v14 = vmul.f32 0.0078125, %v69_v13 }
  0xc7   :  { %v75_v15 = vpop.xlane.xlu1 %74 }
  0xc8   :  { %v82_v16 = vmul.f32 %v78_v14, %v78_v14  ;;  %v80_v17 = vmul.f32 0.0078125, %v75_v15  ;;  %v90_v27 = vsub.f32 %v505_v1, %v78_v14 }
  0xc9   :  { %v71_v18 = vpop.xlane.xlu0 %70 }
  0xca   :  { %v84_v19 = vsub.f32 %v80_v17, %v82_v16  ;;  %v79_v20 = vmul.f32 0.0078125, %v71_v18 }
  0xcb   :  { %v77_v21 = vpop.xlane.xlu1 %76 }
  0xcc   :  { %v86_v22 = vadd.f32 1e-05, %v84_v19  ;;  %v83_v23 = vmul.f32 %v79_v20, %v79_v20  ;;  %v81_v24 = vmul.f32 0.0078125, %v77_v21  ;;  %v91_v31 = vsub.f32 %v507_v2, %v79_v20 }
  0xce   :  { %313 = vrsqrt.f32 %v86_v22  ;;  %v85_v25 = vsub.f32 %v81_v24, %v83_v23 }
  0xd0   :  { %v87_v26 = vadd.f32 1e-05, %v85_v25 }
  0xd2   :  { %315 = vrsqrt.f32 %v87_v26 }
  0xd8   :  { %v314_v28 = vpop.eup %313 }
  0xd9   :  { %v92_v29 = vmul.f32 %v314_v28, %v90_v27 }
  0xdb   :  { %v101_v34 = vmul.f32 %v255_v30, %v92_v29 }
  0xdc   :  { %v316_v32 = vpop.eup %315 }
  0xdd   :  { %v93_v33 = vmul.f32 %v316_v32, %v91_v31  ;;  %v110_v37 = vadd.f32 %v256_v35, %v101_v34 }
  0xdf   :  { %v102_v36 = vmul.f32 %v255_v30, %v93_v33 }
  0xe1   :  { %v111_v38 = vadd.f32 %v256_v35, %v102_v36 }
  0xe3   :  { %v112_v39 = vpack.c.bf16 %v111_v38, %v110_v37 }
  0xe5   :  { %292 = vmatmul.mubr.bf16.vlgmr.msra.gmra.mrb[0].mxu0 %v112_v39 }
 0x1b8   :  { %v218_v42 = vpop.f32.mrb[0].mxu0 }
 0x1b9   :  { %v219_v43 = vadd.f32 %v257_v40, %v218_v42  ;;  %v293_v44 = vpop.f32.mrb[1].mxu0 }
 0x1ba   :  { %v221_v46 = vpop.f32.mrb[2].mxu0 }
 0x1bb   :  { %v229_v47 = vmul.f32 1.1111112, %v219_v43  ;;  %v222_v48 = vadd.f32 %v257_v40, %v221_v46  ;;  %v294_v49 = vpop.f32.mrb[3].mxu0 }
 0x1bd   :  { %v231_v50 = vsel %vm227_vm1, %v229_v47, 0.0  ;;  %v230_v51 = vmul.f32 1.1111112, %v222_v48 }
 0x1be   :  { %v233_v52 = vadd.f32 %v231_v50, %v505_v1 }
 0x1bf   :  { %v232_v53 = vsel %vm228_vm2, %v230_v51, 0.0 }
 0x1c0   :  { %235 = vst [vmem:[#allocation8] sm:$0xff] %v233_v52  ;;  %v234_v54 = vadd.f32 %v232_v53, %v507_v2 }
 0x1c2   :  { %236 = vst [vmem:[#allocation8 + $0x8] sm:$0xff] %v234_v54 }
 0x1c3   :  { %394 = shalt.err (!%p391_p0)
}
 0x1c4   :  { %s395_s20 = scalar_lea.hbm %s549_s6, 256 }
 0x1c5   :  { %p396_p1 = scmp.ne.s32.totalorder %s549_s6, %s395_s20  ;;  %p399_p2 = scmp.lt.u32.totalorder %s395_s20, %s549_s6 }
 0x1c7   :  { %p401_p3 = pnand %p399_p2, %p396_p1 }
 0x1c9   :  { %404 = shalt.err (!%p401_p3)
}
 0x1ca   :  { %248 = dma.vmem_to_hbm [thread:$0]  %s243_s5, 256, %s549_s6, [#allocation4], %s413_s9, %s413_s9, %s414_s10  }
 0x1cb   :  { %409 = dma.done.wait [#allocation4], 256  }
 0x1cc   :  { %410 = vsyncadd [#allocation4], 4294967040 }
 0x1cd   :  { %252 = vsyncpa [#allocation3], 1 }
 0x1ce   :  { %253 = vsyncpa [#allocation6], 1 }
 0x1cf   :  { %254 = vsyncpa [#allocation4], 1 }

</bundles_post_ra>
